<compile_context>
chip_gen: v5e
topology: v5e:2x2
jax: 0.10.0
libtpu: 0.0.40
codegen_flags: <defaults>
</compile_context>

<pallas_src>
import jax
import jax.numpy as jnp
from jax.experimental import pallas as pl
from jax.experimental.pallas import tpu as pltpu


# ---------------------------------------------------------------------------
# Block sizing helpers (padded-VMEM aware).
# ---------------------------------------------------------------------------
def _round_up(x, m):
    return (x + m - 1) // m * m


def _block_vmem_bytes(bblk, F, A, W, tc1, c2, x_itemsize):
    """Padded VMEM footprint of one grid step (double-buffered operands + f32 temps)."""
    x_sub = 16 if x_itemsize == 2 else 8                    # bf16 packs 16 sublanes / tile
    x_buf = bblk * F * _round_up(A, x_sub) * _round_up(W, 128) * x_itemsize
    lw_buf = _round_up(bblk, 8) * _round_up(A, 128) * 4
    out_buf = _round_up(bblk, 8) * _round_up(A + 1, 128) * 4
    w_buf = (F * _round_up(W, 8) * _round_up(tc1, 128)
             + _round_up(tc1, 8) * _round_up(c2, 128)
             + 8 * 128) * 4
    # f32 intermediates (per-f x slab, h1, h2, softmax temps), lane-padded to 128.
    temps = bblk * A * _round_up(max(tc1, c2, W), 128) * 4 * 3
    return 2 * (x_buf + lw_buf + out_buf + w_buf) + temps


def _pick_batch_block(B, F, A, W, tc1, c2, x_itemsize,
                      vmem_budget=18 << 20, target_rows=4096):
    """Pick an 8-aligned batch block: ~2k-4k compute rows, padded VMEM under budget,
    and at least 2 (ideally 8) grid steps whenever B allows (v7x megacore + pipelining)."""
    if B <= 8:
        return B                                            # tiny batch: one full block
    bblk = max(8, min(target_rows // max(A, 1), B) // 8 * 8)
    while bblk > 8 and _block_vmem_bytes(bblk, F, A, W, tc1, c2, x_itemsize) > vmem_budget:
        bblk -= 8
    min_blocks = 8 if B >= 64 else 2
    bblk = min(bblk, _round_up(pl.cdiv(B, min_blocks), 8))
    return max(8, bblk)


# ---------------------------------------------------------------------------
# Kernel.
# ---------------------------------------------------------------------------
def _eiie_kernel(x_ref, lw_ref, w1_ref, w2_ref, aux_ref, out_ref):
    # x_ref:  (bblk, F, A, W)  native NCHW block of X (no wrapper relayout pass)
    # lw_ref: (bblk, A)        previous portfolio weights (assets only), f32
    # w1_ref: (F, W, T*C1)     per-feature banded conv_2d weight (conv-as-matmul), f32
    # w2_ref: (T*C1, C2)       flattened eiie_dense weight, f32
    # aux_ref:(4, P)           row0=b1 tiled over t, row1=b2, row2=w3a, row3=[w3b, b3, cash]
    # out_ref:(bblk, A+1)      softmax portfolio weights, cash first
    bblk, A = lw_ref.shape
    F = x_ref.shape[1]
    W = x_ref.shape[3]
    tc1 = w1_ref.shape[2]
    c2 = w2_ref.shape[1]
    rows = bblk * A

    aux = aux_ref[...]
    b1t = aux[0:1, :tc1]                      # (1, T*C1)  conv_2d bias tiled over t
    b2r = aux[1:2, :c2]                       # (1, C2)
    w3a = aux[2:3, :c2].reshape(1, 1, c2)     # (1, 1, C2) 1x1-conv weight on h2 channels
    w3b = aux[3:4, 0:1]                       # (1, 1)     1x1-conv weight on last_w channel
    b3 = aux[3:4, 1:2]                        # (1, 1)
    cash = aux[3:4, 2:3]                      # (1, 1)     learned cash bias

    # conv_2d + ReLU as a sum over the (tiny, statically unrolled) feature axis of
    # (rows, W) @ (W, T*C1) MXU matmuls.  Each feature slab is sliced straight out of
    # the native NCHW block; widening to f32 first keeps the (bblk, A, W) -> (rows, W)
    # leading-dim merge a layout no-op even when X arrives as bf16.
    h1 = jnp.zeros((rows, tc1), jnp.float32)
    for f in range(F):
        xf = x_ref[:, f, :, :].astype(jnp.float32).reshape(rows, W)
        h1 = h1 + jnp.dot(xf, w1_ref[f], preferred_element_type=jnp.float32)
    h1 = jnp.maximum(h1 + b1t, 0.0)                            # (rows, T*C1)

    # eiie_dense + ReLU: single matmul, K = T*C1 (the (1, W-2) kernel fully contracted).
    h2 = jnp.dot(h1, w2_ref[...], preferred_element_type=jnp.float32) + b2r
    h2 = jnp.maximum(h2, 0.0)                                  # (rows, C2)

    # eiie_output_with_w: 1x1 conv over [h2 channels, last_w] per asset.
    # TODO(synk): could become a third MXU matvec (h2 @ w3a) if the epilogue ever
    # shows in profiles; kept as a lane reduce since the kernel is HBM-bound.
    h2 = h2.reshape(bblk, A, c2)
    score = jnp.sum(h2 * w3a, axis=-1)                         # (bblk, A)
    score = score + lw_ref[...] * w3b + b3

    # Prepend cash bias; lane-axis softmax over the (1 + A) portfolio entries.
    logits = jnp.concatenate([jnp.broadcast_to(cash, (bblk, 1)), score], axis=-1)
    m = jnp.max(logits, axis=-1, keepdims=True)
    e = jnp.exp(logits - m)
    denom = jnp.sum(e, axis=-1, keepdims=True)
    out_ref[...] = (e * pl.reciprocal(denom, approx=True)).astype(out_ref.dtype)


# ---------------------------------------------------------------------------
# Parameter packing (wrapper-side, tiny).
# ---------------------------------------------------------------------------
def pack_eiie_params(window, w1, b1, w2, b2, w3a, w3b, b3, cash):
    """Fold the EIIE conv stack into per-feature banded matmul weights + one aux array."""
    K, F, C1 = w1.shape                                    # K = 3 time taps
    T = window - (K - 1)
    C2 = w2.shape[2]

    # w1_stack[f, w, t*C1 + c1] = w1[w - t, f, c1] for 0 <= w - t < K, else 0.
    wi = jnp.arange(window)[:, None]
    ti = jnp.arange(T)[None, :]
    dt = wi - ti
    valid = (dt >= 0) & (dt < K)
    g = w1[jnp.clip(dt, 0, K - 1)]                         # (W, T, F, C1)
    g = jnp.where(valid[:, :, None, None], g, 0.0)
    w1_stack = jnp.transpose(g, (2, 0, 1, 3)).reshape(F, window, T * C1)

    w2_flat = w2.reshape(T * C1, C2)                       # row index t*C1 + c1

    p = max(T * C1, C2, 3)
    row0 = jnp.pad(jnp.tile(b1.reshape(-1), T), (0, p - T * C1))
    row1 = jnp.pad(b2.reshape(-1), (0, p - C2))
    row2 = jnp.pad(w3a.reshape(-1), (0, p - C2))
    row3 = jnp.concatenate([w3b.reshape(1), b3.reshape(1), cash.reshape(1),
                            jnp.zeros((p - 3,), jnp.float32)])
    aux = jnp.stack([row0, row1, row2, row3]).astype(jnp.float32)
    # Weights stay f32 (tiny streams); only X's dtype matters for HBM traffic.
    return w1_stack.astype(jnp.float32), w2_flat.astype(jnp.float32), aux


# ---------------------------------------------------------------------------
# pallas_call wrappers.
# ---------------------------------------------------------------------------
def eiie_forward_prepacked(X, last_w, w1_stack, w2_flat, aux):
    """X: (B, F, A, W) native NCHW (f32 or bf16); last_w: (B, A) f32 -> (B, A+1) f32."""
    B, F, A, W = X.shape
    tc1 = w1_stack.shape[2]
    c2 = w2_flat.shape[1]
    p = aux.shape[1]
    x_itemsize = jnp.dtype(X.dtype).itemsize

    bblk = _pick_batch_block(B, F, A, W, tc1, c2, x_itemsize)
    grid = (pl.cdiv(B, bblk),)                 # works for any B; tail block is masked
    est = _block_vmem_bytes(bblk, F, A, W, tc1, c2, x_itemsize)
    vmem_limit = int(min(max(2 * est, 32 << 20), 56 << 20))

    return pl.pallas_call(
        _eiie_kernel,
        out_shape=jax.ShapeDtypeStruct((B, A + 1), jnp.float32),
        grid=grid,
        in_specs=[
            pl.BlockSpec((bblk, F, A, W), lambda i: (i, 0, 0, 0)),   # X (native layout)
            pl.BlockSpec((bblk, A), lambda i: (i, 0)),               # last_w
            pl.BlockSpec((F, W, tc1), lambda i: (0, 0, 0)),          # banded conv_2d weight
            pl.BlockSpec((tc1, c2), lambda i: (0, 0)),               # eiie_dense weight
            pl.BlockSpec((4, p), lambda i: (0, 0)),                  # packed biases / scalars
        ],
        out_specs=pl.BlockSpec((bblk, A + 1), lambda i: (i, 0)),
        compiler_params=pltpu.CompilerParams(
            dimension_semantics=("parallel",),   # disjoint batch blocks -> megacore split
            vmem_limit_bytes=vmem_limit),
    )(X, last_w, w1_stack, w2_flat, aux)


@jax.jit
def eiie_forward(X, last_w, w1, b1, w2, b2, w3a, w3b, b3, cash):
    """X: (B, F, A, W) NCHW exactly like the PyTorch module; last_w: (B, A)."""
    _, _, _, W = X.shape
    w1_stack, w2_flat, aux = pack_eiie_params(W, w1, b1, w2, b2, w3a, w3b, b3, cash)
    return eiie_forward_prepacked(X, last_w.astype(jnp.float32), w1_stack, w2_flat, aux)


# ---------------------------------------------------------------------------
# Pure-JAX reference mirroring the PyTorch Conv2d stack exactly.
# ---------------------------------------------------------------------------
def reference_forward(X, last_w, w1, b1, w2, b2, w3a, w3b, b3, cash):
    B, F, A, W = X.shape
    C1 = w1.shape[2]
    C2 = w2.shape[2]
    dn = ("NCHW", "OIHW", "NCHW")
    k1 = jnp.transpose(w1, (2, 1, 0))[:, :, None, :]               # (C1, F, 1, 3)
    h1 = jax.lax.conv_general_dilated(X, k1, (1, 1), "VALID", dimension_numbers=dn)
    h1 = jax.nn.relu(h1 + b1.reshape(1, C1, 1, 1))                 # (B, C1, A, W-2)
    k2 = jnp.transpose(w2, (2, 1, 0))[:, :, None, :]               # (C2, C1, 1, T)
    h2 = jax.lax.conv_general_dilated(h1, k2, (1, 1), "VALID", dimension_numbers=dn)
    h2 = jax.nn.relu(h2 + b2.reshape(1, C2, 1, 1))                 # (B, C2, A, 1)
    lw4 = last_w.reshape(B, 1, A, 1)
    h3 = jnp.concatenate([h2, lw4], axis=1)                        # (B, C2+1, A, 1)
    k3 = jnp.concatenate([w3a, w3b], axis=0).T.reshape(1, C2 + 1, 1, 1)
    s = jax.lax.conv_general_dilated(h3, k3, (1, 1), "VALID", dimension_numbers=dn)
    s = s + b3.reshape(1, 1, 1, 1)
    scores = s[:, 0, :, 0]                                         # (B, A)
    logits = jnp.concatenate(
        [jnp.broadcast_to(cash.reshape(1, 1), (B, 1)), scores], axis=1)
    return jax.nn.softmax(logits, axis=1)                          # (B, A+1)


if __name__ == "__main__":
    # EIIE module shapes: num_features=3, num_assets=8, window_size=16; hidden C1=2, C2=20.
    F, A, W = 3, 8, 16
    C1, C2 = 2, 20
    T = W - 2

    key = jax.random.PRNGKey(0)
    ks = jax.random.split(key, 12)
    w1 = 0.2 * jax.random.normal(ks[0], (3, F, C1), jnp.float32)
    b1 = 0.1 * jax.random.normal(ks[1], (1, C1), jnp.float32)
    w2 = 0.2 * jax.random.normal(ks[2], (T, C1, C2), jnp.float32)
    b2 = 0.1 * jax.random.normal(ks[3], (1, C2), jnp.float32)
    w3a = 0.2 * jax.random.normal(ks[4], (C2, 1), jnp.float32)
    w3b = 0.2 * jax.random.normal(ks[5], (1, 1), jnp.float32)
    b3 = 0.1 * jax.random.normal(ks[6], (1, 1), jnp.float32)
    cash = 0.1 * jax.random.normal(ks[7], (1, 1), jnp.float32)
    params = (w1, b1, w2, b2, w3a, w3b, b3, cash)

    # --- Small batch (module default scale), f32 path. ---
    B = 2
    X = jax.random.normal(ks[8], (B, F, A, W), jnp.float32)
    lw_raw = jax.random.uniform(ks[9], (B, A), jnp.float32) + 0.1
    last_w = lw_raw / jnp.sum(lw_raw, axis=1, keepdims=True)

    out = jax.block_until_ready(eiie_forward(X, last_w, *params))
    ref = reference_forward(X, last_w, *params)
    assert out.shape == (B, A + 1)
    assert bool(jnp.allclose(jnp.sum(out, axis=1), 1.0, atol=5e-3))
    assert bool(jnp.allclose(out, ref, rtol=1e-2, atol=1e-3)), (out, ref)

    # --- Larger, non-divisible batch: exercises the cdiv grid, the masked tail
    #     block and the multi-block "parallel" batch axis. ---
    B2 = 37
    X2 = jax.random.normal(ks[10], (B2, F, A, W), jnp.float32)
    lw2_raw = jax.random.uniform(ks[11], (B2, A), jnp.float32) + 0.1
    last_w2 = lw2_raw / jnp.sum(lw2_raw, axis=1, keepdims=True)

    out2 = jax.block_until_ready(eiie_forward(X2, last_w2, *params))
    ref2 = reference_forward(X2, last_w2, *params)
    assert out2.shape == (B2, A + 1)
    assert bool(jnp.allclose(jnp.sum(out2, axis=1), 1.0, atol=5e-3))
    assert bool(jnp.allclose(out2, ref2, rtol=1e-2, atol=1e-3)), (out2, ref2)

    # --- bf16 X path (halves the dominant HBM stream when the caller holds bf16). ---
    out3 = jax.block_until_ready(eiie_forward(X2.astype(jnp.bfloat16), last_w2, *params))
    assert bool(jnp.allclose(jnp.sum(out3, axis=1), 1.0, atol=2e-2))
    assert bool(jnp.allclose(out3, ref2, rtol=1e-1, atol=5e-2))

    # TODO(synk): compute_loss / compute_metrics / _compute_pure_pc are training-time
    # utilities (loss & portfolio metrics), not part of the forward pass; not kernelized.
    print("KERNEL_OK")
</pallas_src>

<mosaic_0001>
module attributes {stable_mosaic.version = 11 : i64} {
  func.func @_eiie_kernel(%arg0: i32, %arg1: memref<2x3x8x16xf32, #tpu.memory_space<vmem>>, %arg2: memref<2x8xf32, #tpu.memory_space<vmem>>, %arg3: memref<3x16x28xf32, #tpu.memory_space<vmem>>, %arg4: memref<28x20xf32, #tpu.memory_space<vmem>>, %arg5: memref<4x28xf32, #tpu.memory_space<vmem>>, %arg6: memref<2x9xf32, #tpu.memory_space<vmem>>) attributes {dimension_semantics = [#tpu.dimension_semantics<parallel>], iteration_bounds = array<i64: 1>, scalar_prefetch = 0 : i64, scratch_operands = 0 : i64, tpu.core_type = #tpu.core_type<tc>, window_params = [{transform_indices = @transform_0, window_bounds = array<i64: 2, 3, 8, 16>}, {transform_indices = @transform_1, window_bounds = array<i64: 2, 8>}, {pipeline_mode = #tpu.pipeline_mode<synchronous>, transform_indices = @transform_2, window_bounds = array<i64: 3, 16, 28>}, {pipeline_mode = #tpu.pipeline_mode<synchronous>, transform_indices = @transform_3, window_bounds = array<i64: 28, 20>}, {pipeline_mode = #tpu.pipeline_mode<synchronous>, transform_indices = @transform_4, window_bounds = array<i64: 4, 28>}, {transform_indices = @transform_5, window_bounds = array<i64: 2, 9>}]} {
    %c0 = arith.constant 0 : index
    %c0_0 = arith.constant 0 : index
    %0 = vector.load %arg5[%c0, %c0_0] : memref<4x28xf32, #tpu.memory_space<vmem>>, vector<4x28xf32>
    %1 = vector.extract_strided_slice %0 {offsets = [0, 0], sizes = [1, 28], strides = [1, 1]} : vector<4x28xf32> to vector<1x28xf32>
    %2 = vector.extract_strided_slice %0 {offsets = [1, 0], sizes = [1, 20], strides = [1, 1]} : vector<4x28xf32> to vector<1x20xf32>
    %3 = vector.extract_strided_slice %0 {offsets = [2, 0], sizes = [1, 20], strides = [1, 1]} : vector<4x28xf32> to vector<1x20xf32>
    %4 = vector.shape_cast %3 : vector<1x20xf32> to vector<1x1x20xf32>
    %5 = vector.extract_strided_slice %0 {offsets = [3, 0], sizes = [1, 1], strides = [1, 1]} : vector<4x28xf32> to vector<1x1xf32>
    %6 = vector.extract_strided_slice %0 {offsets = [3, 1], sizes = [1, 1], strides = [1, 1]} : vector<4x28xf32> to vector<1x1xf32>
    %7 = vector.extract_strided_slice %0 {offsets = [3, 2], sizes = [1, 1], strides = [1, 1]} : vector<4x28xf32> to vector<1x1xf32>
    %cst = arith.constant 0.000000e+00 : f32
    %8 = vector.broadcast %cst : f32 to vector<16x28xf32>
    %c0_1 = arith.constant 0 : index
    %c0_2 = arith.constant 0 : index
    %c0_3 = arith.constant 0 : index
    %c0_4 = arith.constant 0 : index
    %9 = vector.load %arg1[%c0_1, %c0_2, %c0_3, %c0_4] : memref<2x3x8x16xf32, #tpu.memory_space<vmem>>, vector<2x1x8x16xf32>
    %10 = vector.shape_cast %9 : vector<2x1x8x16xf32> to vector<2x8x16xf32>
    %11 = vector.shape_cast %10 : vector<2x8x16xf32> to vector<16x16xf32>
    %c0_5 = arith.constant 0 : index
    %c0_6 = arith.constant 0 : index
    %c0_7 = arith.constant 0 : index
    %12 = vector.load %arg3[%c0_5, %c0_6, %c0_7] : memref<3x16x28xf32, #tpu.memory_space<vmem>>, vector<1x16x28xf32>
    %13 = vector.shape_cast %12 : vector<1x16x28xf32> to vector<16x28xf32>
    %cst_8 = arith.constant dense<0.000000e+00> : vector<16x28xf32>
    %14 = tpu.matmul %11, %13, %cst_8 {dimension_numbers = #tpu.dot_dimension_numbers<[1], [0], [0], [1], [0, 0, 1, 1], [], []>} : vector<16x16xf32>, vector<16x28xf32>, vector<16x28xf32> -> vector<16x28xf32>
    %15 = arith.addf %8, %14 : vector<16x28xf32>
    %c0_9 = arith.constant 0 : index
    %c1 = arith.constant 1 : index
    %c0_10 = arith.constant 0 : index
    %c0_11 = arith.constant 0 : index
    %16 = vector.load %arg1[%c0_9, %c1, %c0_10, %c0_11] : memref<2x3x8x16xf32, #tpu.memory_space<vmem>>, vector<2x1x8x16xf32>
    %17 = vector.shape_cast %16 : vector<2x1x8x16xf32> to vector<2x8x16xf32>
    %18 = vector.shape_cast %17 : vector<2x8x16xf32> to vector<16x16xf32>
    %c1_12 = arith.constant 1 : index
    %c0_13 = arith.constant 0 : index
    %c0_14 = arith.constant 0 : index
    %19 = vector.load %arg3[%c1_12, %c0_13, %c0_14] : memref<3x16x28xf32, #tpu.memory_space<vmem>>, vector<1x16x28xf32>
    %20 = vector.shape_cast %19 : vector<1x16x28xf32> to vector<16x28xf32>
    %cst_15 = arith.constant dense<0.000000e+00> : vector<16x28xf32>
    %21 = tpu.matmul %18, %20, %cst_15 {dimension_numbers = #tpu.dot_dimension_numbers<[1], [0], [0], [1], [0, 0, 1, 1], [], []>} : vector<16x16xf32>, vector<16x28xf32>, vector<16x28xf32> -> vector<16x28xf32>
    %22 = arith.addf %15, %21 : vector<16x28xf32>
    %c0_16 = arith.constant 0 : index
    %c2 = arith.constant 2 : index
    %c0_17 = arith.constant 0 : index
    %c0_18 = arith.constant 0 : index
    %23 = vector.load %arg1[%c0_16, %c2, %c0_17, %c0_18] : memref<2x3x8x16xf32, #tpu.memory_space<vmem>>, vector<2x1x8x16xf32>
    %24 = vector.shape_cast %23 : vector<2x1x8x16xf32> to vector<2x8x16xf32>
    %25 = vector.shape_cast %24 : vector<2x8x16xf32> to vector<16x16xf32>
    %c2_19 = arith.constant 2 : index
    %c0_20 = arith.constant 0 : index
    %c0_21 = arith.constant 0 : index
    %26 = vector.load %arg3[%c2_19, %c0_20, %c0_21] : memref<3x16x28xf32, #tpu.memory_space<vmem>>, vector<1x16x28xf32>
    %27 = vector.shape_cast %26 : vector<1x16x28xf32> to vector<16x28xf32>
    %cst_22 = arith.constant dense<0.000000e+00> : vector<16x28xf32>
    %28 = tpu.matmul %25, %27, %cst_22 {dimension_numbers = #tpu.dot_dimension_numbers<[1], [0], [0], [1], [0, 0, 1, 1], [], []>} : vector<16x16xf32>, vector<16x28xf32>, vector<16x28xf32> -> vector<16x28xf32>
    %29 = arith.addf %22, %28 : vector<16x28xf32>
    %30 = vector.broadcast %1 : vector<1x28xf32> to vector<16x28xf32>
    %31 = arith.addf %29, %30 : vector<16x28xf32>
    %cst_23 = arith.constant 0.000000e+00 : f32
    %32 = vector.broadcast %cst_23 : f32 to vector<16x28xf32>
    %33 = arith.maximumf %31, %32 : vector<16x28xf32>
    %c0_24 = arith.constant 0 : index
    %c0_25 = arith.constant 0 : index
    %34 = vector.load %arg4[%c0_24, %c0_25] : memref<28x20xf32, #tpu.memory_space<vmem>>, vector<28x20xf32>
    %cst_26 = arith.constant dense<0.000000e+00> : vector<16x20xf32>
    %35 = tpu.matmul %33, %34, %cst_26 {dimension_numbers = #tpu.dot_dimension_numbers<[1], [0], [0], [1], [0, 0, 1, 1], [], []>} : vector<16x28xf32>, vector<28x20xf32>, vector<16x20xf32> -> vector<16x20xf32>
    %36 = vector.broadcast %2 : vector<1x20xf32> to vector<16x20xf32>
    %37 = arith.addf %35, %36 : vector<16x20xf32>
    %cst_27 = arith.constant 0.000000e+00 : f32
    %38 = vector.broadcast %cst_27 : f32 to vector<16x20xf32>
    %39 = arith.maximumf %37, %38 : vector<16x20xf32>
    %40 = vector.shape_cast %39 : vector<16x20xf32> to vector<2x8x20xf32>
    %41 = vector.broadcast %4 : vector<1x1x20xf32> to vector<2x8x20xf32>
    %42 = arith.mulf %40, %41 : vector<2x8x20xf32>
    %cst_28 = arith.constant dense<0.000000e+00> : vector<2x8xf32>
    %43 = vector.multi_reduction <add>, %42, %cst_28 [2] : vector<2x8x20xf32> to vector<2x8xf32>
    %c0_29 = arith.constant 0 : index
    %c0_30 = arith.constant 0 : index
    %44 = vector.load %arg2[%c0_29, %c0_30] : memref<2x8xf32, #tpu.memory_space<vmem>>, vector<2x8xf32>
    %45 = vector.broadcast %5 : vector<1x1xf32> to vector<2x8xf32>
    %46 = arith.mulf %44, %45 : vector<2x8xf32>
    %47 = arith.addf %43, %46 : vector<2x8xf32>
    %48 = vector.broadcast %6 : vector<1x1xf32> to vector<2x8xf32>
    %49 = arith.addf %47, %48 : vector<2x8xf32>
    %50 = vector.shape_cast %7 : vector<1x1xf32> to vector<1x1xf32>
    %51 = vector.broadcast %50 : vector<1x1xf32> to vector<2x1xf32>
    %52 = tpu.concatenate %51, %49 in 1 : vector<2x1xf32>, vector<2x8xf32> -> vector<2x9xf32>
    %cst_31 = arith.constant dense<0xFF800000> : vector<2xf32>
    %53 = vector.multi_reduction <maximumf>, %52, %cst_31 [1] : vector<2x9xf32> to vector<2xf32>
    %54 = vector.shape_cast %53 : vector<2xf32> to vector<2x1xf32>
    %55 = vector.broadcast %54 : vector<2x1xf32> to vector<2x9xf32>
    %56 = arith.subf %52, %55 : vector<2x9xf32>
    %57 = math.exp %56 : vector<2x9xf32>
    %cst_32 = arith.constant dense<0.000000e+00> : vector<2xf32>
    %58 = vector.multi_reduction <add>, %57, %cst_32 [1] : vector<2x9xf32> to vector<2xf32>
    %59 = vector.shape_cast %58 : vector<2xf32> to vector<2x1xf32>
    %60 = tpu.reciprocal %59 {approx = true} : vector<2x1xf32> -> vector<2x1xf32>
    %61 = vector.broadcast %60 : vector<2x1xf32> to vector<2x9xf32>
    %62 = arith.mulf %57, %61 : vector<2x9xf32>
    %c0_33 = arith.constant 0 : index
    %c0_34 = arith.constant 0 : index
    %63 = vector.load %arg6[%c0_33, %c0_34] : memref<2x9xf32, #tpu.memory_space<vmem>>, vector<2x9xf32>
    tpu.vector_store %arg6[%c0_33, %c0_34], %62 {strides = array<i32>} : memref<2x9xf32, #tpu.memory_space<vmem>>, vector<2x9xf32>,
    return
  }
  func.func @transform_0(%arg0: i32) -> (i32, i32, i32, i32) {
    %c0_i32 = arith.constant 0 : i32
    %c0_i32_0 = arith.constant 0 : i32
    %c0_i32_1 = arith.constant 0 : i32
    %c0_i32_2 = arith.constant 0 : i32
    return %arg0, %c0_i32, %c0_i32_0, %c0_i32_1 : i32, i32, i32, i32
  }
  func.func @transform_1(%arg0: i32) -> (i32, i32) {
    %c0_i32 = arith.constant 0 : i32
    %c0_i32_0 = arith.constant 0 : i32
    return %arg0, %c0_i32 : i32, i32
  }
  func.func @transform_2(%arg0: i32) -> (i32, i32, i32) {
    %c0_i32 = arith.constant 0 : i32
    %c0_i32_0 = arith.constant 0 : i32
    %c0_i32_1 = arith.constant 0 : i32
    %c0_i32_2 = arith.constant 0 : i32
    return %c0_i32, %c0_i32_0, %c0_i32_1 : i32, i32, i32
  }
  func.func @transform_3(%arg0: i32) -> (i32, i32) {
    %c0_i32 = arith.constant 0 : i32
    %c0_i32_0 = arith.constant 0 : i32
    %c0_i32_1 = arith.constant 0 : i32
    return %c0_i32, %c0_i32_0 : i32, i32
  }
  func.func @transform_4(%arg0: i32) -> (i32, i32) {
    %c0_i32 = arith.constant 0 : i32
    %c0_i32_0 = arith.constant 0 : i32
    %c0_i32_1 = arith.constant 0 : i32
    return %c0_i32, %c0_i32_0 : i32, i32
  }
  func.func @transform_5(%arg0: i32) -> (i32, i32) {
    %c0_i32 = arith.constant 0 : i32
    %c0_i32_0 = arith.constant 0 : i32
    return %arg0, %c0_i32 : i32, i32
  }
}

</mosaic_0001>

<bundles_post_ra>
// kernel: tile.6
= control target key start
LH: loop header
LB: loop body
LE: loop exit
PB: predicated region body
PF: predicated region fallthrough
CT: control target
= control target key end

     0   :  { %s28_s0 = inlined_call_operand.vmem [shape: f32[2], index: 0, kind: input, shape index: {}]   ;;  %s29_s1 = inlined_call_operand.vmem [shape: f32[14,2], index: 1, kind: output, shape index: {}]  }
   0x1   :  { %v4_v0 = vld [vmem:[%s28_s0] ss:$0 sm:$0xff] }
   0x2   :  { %5 = vst [vmem:[%s29_s1] sm:$0xff] %v4_v0 }
   0x3   :  { %8 = vst [vmem:[%s29_s1 + $0x8] sm:$0xff] %v4_v0 }

// kernel: eiie_forward.1
= control target key start
LH: loop header
LB: loop body
LE: loop exit
PB: predicated region body
PF: predicated region fallthrough
CT: control target
= control target key end

     0   :  { %vm32_vm0 = vcmask 130048   ;;  %s435_s0 = inlined_call_operand.vmem [shape: f32[2,3,8,16], index: 0, kind: input, shape index: {}]   ;;  %s436_s1 = inlined_call_operand.vmem [shape: f32[2,8], index: 1, kind: input, shape index: {}]   ;;  %s437_s2 = inlined_call_operand.vmem [shape: f32[3,16,28], index: 2, kind: input, shape index: {}]   ;;  %s438_s3 = inlined_call_operand.vmem [shape: f32[28,20], index: 3, kind: input, shape index: {}]   ;;  %s439_s4 = inlined_call_operand.vmem [shape: f32[4,28], index: 4, kind: input, shape index: {}]   ;;  %s440_s5 = inlined_call_operand.hbm [shape: f32[2,9], index: 5, kind: output, shape index: {}]  }
   0x1   :  { %v280_v0 = vld [vmem:[%s437_s2 + $0x28] sm:$0xff]  ;;  %v279_v1 = vld [vmem:[%s437_s2 + $0x20] sm:$0xff]  ;;  %v277_v2 = vld [vmem:[%s435_s0 + $0x10] sm:$0xff] }
   0x2   :  { %117 = vmatpush.msra.mxu2 %v280_v0  ;;  %v272_v3 = vld [vmem:[%s437_s2 + $0x18] sm:$0xff]  ;;  %v25_v4 = vld [vmem:[%s437_s2 + $0x8] sm:$0xff]  ;;  %v271_v5 = vld [vmem:[%s437_s2 + $0x10] sm:$0xff] }
   0x3   :  { %53 = vmatpush.msra.mxu0 %v272_v3  ;;  %82 = vmatpush.msra.mxu1 %v25_v4  ;;  %v24_v6 = vld [vmem:[%s437_s2] sm:$0xff]  ;;  %v269_v7 = vld [vmem:[%s435_s0 + $0x8] sm:$0xff] }
   0x4   :  { %118 = vmatpush.msra.mxu2 %v279_v1  ;;  %v22_v8 = vld [vmem:[%s435_s0] sm:$0xff] }
   0x5   :  { %281 = vmatmul.msk.f32.vlgmr.msra.gmra.mxu2 %vm32_vm0, %v277_v2  ;;  %54 = vmatpush.msra.mxu0 %v271_v5 }
   0x6   :  { %10 = vsyncpa [#allocation3], 0  ;;  %83 = vmatpush.msra.mxu1 %v24_v6  ;;  %273 = vmatmul.msk.f32.vlgmr.msra.gmra.mxu0 %vm32_vm0, %v269_v7  ;;  %v278_v9 = vld [vmem:[%s435_s0 + $0x28] sm:$0xff]  ;;  %v270_v10 = vld [vmem:[%s435_s0 + $0x20] sm:$0xff]  ;;  %vm145_vm1 = vcmask 1043456   ;;  %s328_s25 = smov 127   ;;  %v193_v33 = vlaneseq }
   0x7   :  { %275 = vmatmul.msk.f32.vlgmr.msra.gmra.mxu1 %vm32_vm0, %v22_v8  ;;  %v23_v11 = vld [vmem:[%s435_s0 + $0x18] sm:$0xff]  ;;  %v135_v13 = vld [vmem:[%s438_s3 + $0x10] sm:$0xff]  ;;  %v134_v14 = vld [vmem:[%s438_s3 + $0x8] sm:$0xff]  ;;  %vm138_vm2 = vcmask 228352   ;;  %vm177_vm3 = vcmask 162816   ;;  %v329_v53 = vmov 0  }
   0x8   :  { %v136_v12 = vld [vmem:[%s438_s3 + $0x18] sm:$0xf]  ;;  %v133_v15 = vld [vmem:[%s438_s3] sm:$0xff]  ;;  %v194_v36 = vshrl.u32 %v193_v33, 7  ;;  %297 = vset.pattern.permute.xlu0 %v329_v53  ;;  %s330_s27 = smov 126   ;;  %v231_v1 = vand.u32 127, %v193_v33 }
   0x9   :  { %283 = vmatpush.msk.msra.mxu3 %vm145_vm1, %v136_v12  ;;  %v419_v16 = vld [vmem:[%s439_s4] sm:$0xf]  ;;  %vm235_vm4 = vcmask 1041409   ;;  %vm238_vm5 = vcmask 7168   ;;  %vm240_vm6 = vcmask 66560   ;;  %s331_s28 = smov [#allocation2]  }
   0xa   :  { %v186_v17 = vrot.slane %v419_v16, 3  ;;  %v128_v21 = vperm.slane %v419_v16, 0  ;;  %v184_v34 = vld [vmem:[%s436_s1] sm:$0x3]  ;;  %295 = vset.pattern.permute.xlu2 %v194_v36  ;;  %294 = vset.pattern.permute.xlu1 %v194_v36  ;;  %v137_v39 = vperm.slane %v419_v16, 1  ;;  %v174_v42 = vperm.slane %v419_v16, 2 }
   0xb   :  { %162 = vmatpush.msra.mxu3 %v135_v13  ;;  %v217_v63 = vperm.slane %v419_v16, 3  ;;  %v232_v3 = vadd.s32 4294967295, %v231_v1  ;;  %s258_s29 = sshll.u32 %s331_s28, 4  ;;  %s260_s7 = sshll.u32 %s440_s5, 4  ;;  %s259_s29 = int_to_ptr.vmem [resolvable:$true] %s258_s29  ;;  %s261_s7 = int_to_ptr.hbm [resolvable:$true] %s260_s7 }
   0xc   :  { %210 = vrot.lane.b32.xlu0 %v186_v17, %s328_s25  ;;  %286 = vpush %v186_v17 }
   0xd   :  { %282 = vmatmul.msk.f32.gmra.mxu2 %vm32_vm0, %v278_v9  ;;  %163 = vmatpush.msra.mxu3 %v134_v14 }
   0xe   :  { %274 = vmatmul.msk.f32.gmra.mxu0 %vm32_vm0, %v270_v10 }
   0xf   :  { %276 = vmatmul.msk.f32.gmra.mxu1 %vm32_vm0, %v23_v11  ;;  %164 = vmatpush.msra.mxu3 %v133_v15 }
  0x3d   :  { %s287_s3 = spop %286 }
  0x3e   :  { %v188_v35 = vstv %s287_s3 }
  0x3f   :  { %v190_v37 = vmul.f32 %v188_v35, %v184_v34 }
  0x41   :  { %v199_v38 = vperm.slane %v190_v37, 1  ;;  %v192_v52 = vperm.slane %v190_v37, 0 }
  0x43   :  { %204 = vperm.xlu2 %295, %v199_v38  }
  0x4b   :  { %296 = vset.pattern.permute.xlu2 %v329_v53 }
  0x7e   :  { %v211_v48 = vpop.permute.xlu0 %210 }
  0x7f   :  { %288 = vpush %v211_v48 }
  0x83   :  { %v56_v18 = vpop.f32.mrf.mxu0 }
  0x84   :  { %v85_v19 = vpop.f32.mrf.mxu1 }
  0x85   :  { %v86_v20 = vadd.f32 %v85_v19, %v56_v18 }
  0x88   :  { %v120_v22 = vpop.f32.mrf.mxu2 }
  0x89   :  { %v126_v23 = vadd.f32 %v120_v22, %v86_v20 }
  0x8b   :  { %v129_v24 = vadd.f32 %v128_v21, %v126_v23  ;;  %v59_v25 = vpop.f32.mrf.mxu0 }
  0x8c   :  { %v88_v26 = vpop.f32.mrf.mxu1 }
  0x8d   :  { %v131_v27 = vmax.f32 %v129_v24, 0.0  ;;  %v89_v28 = vadd.f32 %v88_v26, %v59_v25 }
  0x8f   :  { %284 = vmatmul.msk.f32.vlgmr.msra.gmra.mxu3 %vm138_vm2, %v131_v27 }
  0x90   :  { %v123_v29 = vpop.f32.mrf.mxu2 }
  0x91   :  { %v127_v30 = vadd.f32 %v123_v29, %v89_v28 }
  0x93   :  { %v130_v31 = vadd.f32 %v128_v21, %v127_v30 }
  0x95   :  { %v132_v32 = vmax.f32 %v130_v31, 0.0 }
  0x97   :  { %285 = vmatmul.msk.f32.gmra.mxu3 %vm138_vm2, %v132_v32 }
  0x9d   :  { %v205_v60 = vpop.permute.xlu2 %204 }
  0xb0   :  { %s289_s1 = spop %288 }
  0xb1   :  { %v213_v58 = vstv %s289_s1 }
 0x112   :  { %v166_v40 = vpop.f32.mrf.mxu3 }
 0x113   :  { %v167_v41 = vadd.f32 %v166_v40, %v137_v39 }
 0x115   :  { %v172_v43 = vmax.f32 %v167_v41, 0.0 }
 0x117   :  { %v175_v44 = vmul.f32 %v174_v42, %v172_v43 }
 0x119   :  { %v178_v45 = vsel %vm177_vm3, %v175_v44, 0.0 }
 0x11a   :  { %v169_v46 = vpop.f32.mrf.mxu3  ;;  %179 = vadd.xlane.f32.xlu0 %v178_v45 }
 0x11b   :  { %v170_v47 = vadd.f32 %v169_v46, %v137_v39 }
 0x11d   :  { %v173_v49 = vmax.f32 %v170_v47, 0.0 }
 0x11f   :  { %v176_v50 = vmul.f32 %v174_v42, %v173_v49 }
 0x121   :  { %v181_v51 = vsel %vm177_vm3, %v176_v50, 0.0 }
 0x122   :  { %182 = vadd.xlane.f32.xlu1 %v181_v51 }
 0x13b   :  { %197 = vperm.xlu1 %294, %v192_v52  }
 0x18d   :  { %v180_v55 = vpop.xlane.xlu0 %179 }
 0x195   :  { %v183_v54 = vpop.xlane.xlu1 %182 }
 0x196   :  { %v209_v61 = vadd.f32 %v205_v60, %v183_v54 }
 0x198   :  { %v216_v62 = vadd.f32 %v213_v58, %v209_v61 }
 0x1ad   :  { %v198_v56 = vpop.permute.xlu1 %197 }
 0x1ae   :  { %v208_v57 = vadd.f32 %v198_v56, %v180_v55 }
 0x1b0   :  { %v215_v59 = vadd.f32 %v213_v58, %v208_v57 }
 0x1b2   :  { %225 = vperm.xlu2 %296, %v215_v59  }
 0x1ba   :  { %228 = vperm.xlu2 %296, %v216_v62  }
 0x1c2   :  { %219 = vrot.lane.b32.xlu2 %v217_v63, %s330_s27 }
 0x20c   :  { %v226_v0 = vpop.permute.xlu2 %225 }
 0x20d   :  { %v233_v5 = vperm.slane %v226_v0, %v232_v3 }
 0x214   :  { %v229_v2 = vpop.permute.xlu2 %228 }
 0x215   :  { %v234_v4 = vperm.slane %v229_v2, %v232_v3 }
 0x217   :  { %v236_v7 = vsel %vm235_vm4, %v234_v4, %v233_v5 }
 0x21c   :  { %v220_v6 = vpop.permute.xlu2 %219 }
 0x21d   :  { %v239_v8 = vsel %vm238_vm5, %v220_v6, %v236_v7 }
 0x21e   :  { %v241_v9 = vsel %vm240_vm6, %v239_v8, -inf }
 0x21f   :  { %242 = vmax.xlane.f32.xlu2 %v241_v9 }
 0x292   :  { %v243_v10 = vpop.xlane.xlu2 %242 }
 0x293   :  { %v244_v11 = vsub.f32 %v239_v8, %v243_v10 }
 0x295   :  { %v245_v12 = vmul.f32 1.442695, %v244_v11 }
 0x297   :  { %298 = vpow2.f32 %v245_v12 }
 0x29d   :  { %v299_v13 = vpop.eup %298 }
 0x29e   :  { %v247_v14 = vsel %vm240_vm6, %v299_v13, 0.0 }
 0x29f   :  { %248 = vadd.xlane.f32.xlu1 %v247_v14 }
 0x312   :  { %v249_v15 = vpop.xlane.xlu1 %248 }
 0x313   :  { %300 = vrcp.f32 %v249_v15 }
 0x319   :  { %v301_v16 = vpop.eup %300 }
 0x31a   :  { %v251_v17 = vmul.f32 %v301_v16, %v299_v13 }
 0x31c   :  { %252 = vst.msk [vmem:[#allocation2] sm:$0x3] %vm240_vm6, %v251_v17 }
 0x31d   :  { %263 = dma.vmem_to_hbm [thread:$0]  %s259_s29, 32, %s261_s7, [#allocation3]  }
 0x31e   :  { %326 = dma.done.wait [#allocation3], 32  }
 0x31f   :  { %327 = vsyncadd [#allocation3], 4294967264 }
 0x320   :  { %268 = vsyncpa [#allocation3], 1 }

</bundles_post_ra>
